<compile_context>
chip_gen: v6e
topology: v6e:2x2x1
jax: 0.10.0
libtpu: 0.0.40
codegen_flags: <defaults>
</compile_context>

<pallas_src>
import jax
import jax.numpy as jnp
from jax.experimental import pallas as pl
from jax.experimental.pallas import tpu as pltpu


def _make_kernel(needs_mask):
    def kernel(pred_ref, gt_ref, mask_ref, area_ref, rmask_ref, sig_ref,
               loss_out_ref, cnt_out_ref, loss_acc, cnt_acc):
        step = pl.program_id(1)

        @pl.when(step == 0)
        def _init():
            loss_acc[...] = jnp.zeros_like(loss_acc)
            cnt_acc[...] = jnp.zeros_like(cnt_acc)

        pxy = pred_ref[:, :, 0:2]          # (tile, K, 2)
        gxy = gt_ref[:, :, 0:2]            # (tile, K, 2)
        mask = mask_ref[...]               # (tile, K, 1)
        area = area_ref[...]               # (tile, 1, 1)
        sig = sig_ref[...]                 # (1, K, 1)

        diff = pxy - gxy
        d = jnp.sum(diff * diff, axis=2, keepdims=True)           # (tile, K, 1)

        # e = d / (2*sigma)^2 / (area + 1e-9) / 2   ->   -e = d * neg_scale
        neg_scale = (-0.125 / (sig * sig)) * (1.0 / (area + 1e-9))
        loss_elems = (1.0 - jnp.exp(d * neg_scale)) * mask         # exp -> EUP
        cnt_elems = jnp.where(mask != 0.0, 1.0, 0.0)

        if needs_mask:
            # Zero rows past N (partial / overflow blocks); where() also cuts
            # off any NaN/Inf coming from the undefined out-of-range data.
            valid = jnp.broadcast_to(rmask_ref[...], loss_elems.shape) != 0.0
            loss_elems = jnp.where(valid, loss_elems, 0.0)
            cnt_elems = jnp.where(valid, cnt_elems, 0.0)

        # Row-axis reduction only: plain vreg adds, no XLU/SMEM chain per step.
        loss_acc[...] += jnp.sum(loss_elems, axis=0, keepdims=True)
        cnt_acc[...] += jnp.sum(cnt_elems, axis=0, keepdims=True)

        @pl.when(step == pl.num_programs(1) - 1)
        def _finalize():
            loss_out_ref[0, 0, 0] = jnp.sum(loss_acc[...])
            cnt_out_ref[0, 0, 0] = jnp.sum(cnt_acc[...])

    return kernel


def keypoint_loss(pred_kpts, gt_kpts, kpt_mask, area, sigmas, *,
                  tile_n=128, num_splits=2):
    """KeypointLoss forward.

    pred_kpts: (N, K, >=2), gt_kpts: (N, K, >=2), kpt_mask: (N, K),
    area: (N, 1), sigmas: (K,).  Returns scalar f32 loss.
    """
    N, K = kpt_mask.shape
    dp = pred_kpts.shape[-1]
    dg = gt_kpts.shape[-1]
    assert pred_kpts.shape[:2] == (N, K) and gt_kpts.shape[:2] == (N, K)
    assert dp >= 2 and dg >= 2
    f32 = jnp.float32

    # Natural layouts; the reshapes below are metadata-only (no HBM copies).
    pred = pred_kpts.astype(f32)
    gt = gt_kpts.astype(f32)
    mask3 = kpt_mask.astype(f32).reshape(N, K, 1)
    area3 = area.astype(f32).reshape(N, 1, 1)
    sig3 = sigmas.astype(f32).reshape(1, K, 1)

    tile = max(1, min(int(tile_n), N))
    total_blocks = -(-N // tile)
    splits = max(1, min(int(num_splits), total_blocks))
    steps = -(-total_blocks // splits)
    padded_rows = splits * steps * tile
    needs_mask = padded_rows != N
    last_block = total_blocks - 1

    # Tiny row-validity vector (4 bytes per padded row) -- the only
    # wrapper-side array we build, and only consulted when the grid
    # over-covers N.
    row_mask = (jnp.arange(padded_rows, dtype=jnp.int32) < N)
    row_mask = row_mask.astype(f32).reshape(padded_rows, 1, 1)

    def data_idx(c, i):
        idx = c * steps + i
        if needs_mask:
            # Overflow steps re-read the last real block; their rows are all
            # invalid so they contribute exactly zero.
            idx = jnp.minimum(idx, last_block)
        return idx

    grid = (splits, steps)

    in_specs = [
        pl.BlockSpec((tile, K, dp), lambda c, i: (data_idx(c, i), 0, 0)),
        pl.BlockSpec((tile, K, dg), lambda c, i: (data_idx(c, i), 0, 0)),
        pl.BlockSpec((tile, K, 1), lambda c, i: (data_idx(c, i), 0, 0)),
        pl.BlockSpec((tile, 1, 1), lambda c, i: (data_idx(c, i), 0, 0)),
        pl.BlockSpec((tile, 1, 1), lambda c, i: (c * steps + i, 0, 0)),
        pl.BlockSpec((1, K, 1), lambda c, i: (0, 0, 0)),
    ]
    out_specs = (
        pl.BlockSpec((1, 1, 1), lambda c, i: (c, 0, 0),
                     memory_space=pltpu.SMEM),
        pl.BlockSpec((1, 1, 1), lambda c, i: (c, 0, 0),
                     memory_space=pltpu.SMEM),
    )
    out_shape = (
        jax.ShapeDtypeStruct((splits, 1, 1), f32),
        jax.ShapeDtypeStruct((splits, 1, 1), f32),
    )

    loss_sums, cnt_sums = pl.pallas_call(
        _make_kernel(needs_mask),
        out_shape=out_shape,
        grid_spec=pltpu.PrefetchScalarGridSpec(
            num_scalar_prefetch=0,
            grid=grid,
            in_specs=in_specs,
            out_specs=out_specs,
            scratch_shapes=[pltpu.VMEM((1, K, 1), f32),
                            pltpu.VMEM((1, K, 1), f32)],
        ),
        compiler_params=pltpu.CompilerParams(
            dimension_semantics=("parallel", "arbitrary")),
    )(pred, gt, mask3, area3, row_mask, sig3)

    # kpt_loss_factor * mean folds to sum(loss_elems) / (count_nonzero + 1e-9).
    return jnp.sum(loss_sums) / (jnp.sum(cnt_sums) + 1e-9)


def keypoint_loss_ref(pred_kpts, gt_kpts, kpt_mask, area, sigmas):
    """Pure-JAX reference mirroring the PyTorch module."""
    d = (pred_kpts[..., 0] - gt_kpts[..., 0]) ** 2 + \
        (pred_kpts[..., 1] - gt_kpts[..., 1]) ** 2
    factor = (jnp.sum(kpt_mask != 0) + jnp.sum(kpt_mask == 0)) / \
             (jnp.sum(kpt_mask != 0) + 1e-9)
    e = d / (2 * sigmas) ** 2 / (area + 1e-9) / 2
    return factor * jnp.mean((1 - jnp.exp(-e)) * kpt_mask)


if __name__ == "__main__":
    K = 17  # COCO-style keypoints
    # Deterministic sigmas (module "parameter"): evenly spaced OKS-like values.
    sigmas = (jnp.arange(K, dtype=jnp.float32) + 1.0) / (2.0 * K)

    def run_case(key, n, tile_n):
        k1, k2, k3, k4 = jax.random.split(key, 4)
        pred = jax.random.normal(k1, (n, K, 3), dtype=jnp.float32) * 4.0
        gt = jax.random.normal(k2, (n, K, 2), dtype=jnp.float32) * 4.0
        mask = (jax.random.uniform(k3, (n, K)) > 0.3).astype(jnp.float32)
        area = jax.random.uniform(k4, (n, 1), dtype=jnp.float32) * 50.0 + 1.0
        out = keypoint_loss(pred, gt, mask, area, sigmas, tile_n=tile_n)
        out = jax.block_until_ready(out)
        ref = keypoint_loss_ref(pred, gt, mask, area, sigmas)
        assert jnp.allclose(out, ref, rtol=1e-5, atol=1e-6), (n, tile_n, out, ref)

    keys = jax.random.split(jax.random.PRNGKey(0), 3)
    # Small common case: whole input in one block, grid (1, 1).
    run_case(keys[0], 8, 128)
    # Multi-step grid + two row splits (v7x megacore path), evenly divided.
    run_case(keys[1], 64, 8)
    # Ragged N: partial last block + an overflow step on the second split.
    run_case(keys[2], 50, 8)

    print("KERNEL_OK")
</pallas_src>

<mosaic_0001>
module attributes {stable_mosaic.version = 11 : i64} {
  func.func @kernel(%arg0: i32, %arg1: i32, %arg2: memref<8x17x3xf32, #tpu.memory_space<vmem>>, %arg3: memref<8x17x2xf32, #tpu.memory_space<vmem>>, %arg4: memref<8x17x1xf32, #tpu.memory_space<vmem>>, %arg5: memref<8x1x1xf32, #tpu.memory_space<vmem>>, %arg6: memref<8x1x1xf32, #tpu.memory_space<vmem>>, %arg7: memref<1x17x1xf32, #tpu.memory_space<vmem>>, %arg8: memref<1x1x1xf32, #tpu.memory_space<smem>>, %arg9: memref<1x1x1xf32, #tpu.memory_space<smem>>, %arg10: memref<1x17x1xf32, #tpu.memory_space<vmem>>, %arg11: memref<1x17x1xf32, #tpu.memory_space<vmem>>) attributes {dimension_semantics = [#tpu.dimension_semantics<parallel>, #tpu.dimension_semantics<arbitrary>], iteration_bounds = array<i64: 1, 1>, scalar_prefetch = 0 : i64, scratch_operands = 2 : i64, tpu.core_type = #tpu.core_type<tc>, window_params = [{transform_indices = @transform_0, window_bounds = array<i64: 8, 17, 3>}, {transform_indices = @transform_1, window_bounds = array<i64: 8, 17, 2>}, {transform_indices = @transform_2, window_bounds = array<i64: 8, 17, 1>}, {transform_indices = @transform_3, window_bounds = array<i64: 8, 1, 1>}, {transform_indices = @transform_4, window_bounds = array<i64: 8, 1, 1>}, {pipeline_mode = #tpu.pipeline_mode<synchronous>, transform_indices = @transform_5, window_bounds = array<i64: 1, 17, 1>}, {transform_indices = @transform_6, window_bounds = array<i64: 1, 1, 1>}, {transform_indices = @transform_7, window_bounds = array<i64: 1, 1, 1>}]} {
    %c0_i32 = arith.constant 0 : i32
    %0 = arith.cmpi eq, %arg1, %c0_i32 : i32
    %1 = arith.extui %0 : i1 to i32
    %c0_i32_0 = arith.constant 0 : i32
    %2 = arith.cmpi ne, %1, %c0_i32_0 : i32
    scf.if %2 {
      %cst_38 = arith.constant 0.000000e+00 : f32
      %45 = vector.broadcast %cst_38 : f32 to vector<1x17x1xf32>
      %c0_39 = arith.constant 0 : index
      %c0_40 = arith.constant 0 : index
      %c0_41 = arith.constant 0 : index
      %46 = vector.load %arg10[%c0_39, %c0_40, %c0_41] : memref<1x17x1xf32, #tpu.memory_space<vmem>>, vector<1x17x1xf32>
      tpu.vector_store %arg10[%c0_39, %c0_40, %c0_41], %45 {strides = array<i32>} : memref<1x17x1xf32, #tpu.memory_space<vmem>>, vector<1x17x1xf32>,
      %cst_42 = arith.constant 0.000000e+00 : f32
      %47 = vector.broadcast %cst_42 : f32 to vector<1x17x1xf32>
      %c0_43 = arith.constant 0 : index
      %c0_44 = arith.constant 0 : index
      %c0_45 = arith.constant 0 : index
      %48 = vector.load %arg11[%c0_43, %c0_44, %c0_45] : memref<1x17x1xf32, #tpu.memory_space<vmem>>, vector<1x17x1xf32>
      tpu.vector_store %arg11[%c0_43, %c0_44, %c0_45], %47 {strides = array<i32>} : memref<1x17x1xf32, #tpu.memory_space<vmem>>, vector<1x17x1xf32>,
    } else {
    }
    %c0 = arith.constant 0 : index
    %c0_1 = arith.constant 0 : index
    %c0_2 = arith.constant 0 : index
    %3 = vector.load %arg2[%c0, %c0_1, %c0_2] : memref<8x17x3xf32, #tpu.memory_space<vmem>>, vector<8x17x2xf32>
    %c0_3 = arith.constant 0 : index
    %c0_4 = arith.constant 0 : index
    %c0_5 = arith.constant 0 : index
    %4 = vector.load %arg3[%c0_3, %c0_4, %c0_5] : memref<8x17x2xf32, #tpu.memory_space<vmem>>, vector<8x17x2xf32>
    %c0_6 = arith.constant 0 : index
    %c0_7 = arith.constant 0 : index
    %c0_8 = arith.constant 0 : index
    %5 = vector.load %arg4[%c0_6, %c0_7, %c0_8] : memref<8x17x1xf32, #tpu.memory_space<vmem>>, vector<8x17x1xf32>
    %c0_9 = arith.constant 0 : index
    %c0_10 = arith.constant 0 : index
    %c0_11 = arith.constant 0 : index
    %6 = vector.load %arg5[%c0_9, %c0_10, %c0_11] : memref<8x1x1xf32, #tpu.memory_space<vmem>>, vector<8x1x1xf32>
    %c0_12 = arith.constant 0 : index
    %c0_13 = arith.constant 0 : index
    %c0_14 = arith.constant 0 : index
    %7 = vector.load %arg7[%c0_12, %c0_13, %c0_14] : memref<1x17x1xf32, #tpu.memory_space<vmem>>, vector<1x17x1xf32>
    %8 = arith.subf %3, %4 : vector<8x17x2xf32>
    %9 = arith.mulf %8, %8 : vector<8x17x2xf32>
    %cst = arith.constant dense<0.000000e+00> : vector<8x17xf32>
    %10 = vector.multi_reduction <add>, %9, %cst [2] : vector<8x17x2xf32> to vector<8x17xf32>
    %11 = vector.shape_cast %10 : vector<8x17xf32> to vector<8x17x1xf32>
    %12 = arith.mulf %7, %7 : vector<1x17x1xf32>
    %cst_15 = arith.constant -1.250000e-01 : f32
    %13 = vector.broadcast %cst_15 : f32 to vector<1x17x1xf32>
    %14 = arith.divf %13, %12 : vector<1x17x1xf32>
    %cst_16 = arith.constant 9.99999971E-10 : f32
    %15 = vector.broadcast %cst_16 : f32 to vector<8x1x1xf32>
    %16 = arith.addf %6, %15 : vector<8x1x1xf32>
    %cst_17 = arith.constant 1.000000e+00 : f32
    %17 = vector.broadcast %cst_17 : f32 to vector<8x1x1xf32>
    %18 = arith.divf %17, %16 : vector<8x1x1xf32>
    %19 = vector.broadcast %14 : vector<1x17x1xf32> to vector<8x17x1xf32>
    %20 = vector.broadcast %18 : vector<8x1x1xf32> to vector<8x17x1xf32>
    %21 = arith.mulf %19, %20 : vector<8x17x1xf32>
    %22 = arith.mulf %11, %21 : vector<8x17x1xf32>
    %23 = math.exp %22 : vector<8x17x1xf32>
    %cst_18 = arith.constant 1.000000e+00 : f32
    %24 = vector.broadcast %cst_18 : f32 to vector<8x17x1xf32>
    %25 = arith.subf %24, %23 : vector<8x17x1xf32>
    %26 = arith.mulf %25, %5 : vector<8x17x1xf32>
    %cst_19 = arith.constant 0.000000e+00 : f32
    %27 = vector.broadcast %cst_19 : f32 to vector<8x17x1xf32>
    %28 = arith.cmpf one, %5, %27 : vector<8x17x1xf32>
    %cst_20 = arith.constant 1.000000e+00 : f32
    %cst_21 = arith.constant 0.000000e+00 : f32
    %29 = vector.broadcast %cst_20 : f32 to vector<8x17x1xf32>
    %30 = vector.broadcast %cst_21 : f32 to vector<8x17x1xf32>
    %31 = arith.select %28, %29, %30 : vector<8x17x1xi1>, vector<8x17x1xf32>
    %c0_22 = arith.constant 0 : index
    %c0_23 = arith.constant 0 : index
    %c0_24 = arith.constant 0 : index
    %32 = vector.load %arg10[%c0_22, %c0_23, %c0_24] : memref<1x17x1xf32, #tpu.memory_space<vmem>>, vector<1x17x1xf32>
    %cst_25 = arith.constant dense<0.000000e+00> : vector<17x1xf32>
    %33 = vector.multi_reduction <add>, %26, %cst_25 [0] : vector<8x17x1xf32> to vector<17x1xf32>
    %34 = vector.shape_cast %33 : vector<17x1xf32> to vector<1x17x1xf32>
    %35 = arith.addf %32, %34 : vector<1x17x1xf32>
    %c0_26 = arith.constant 0 : index
    %c0_27 = arith.constant 0 : index
    %c0_28 = arith.constant 0 : index
    %36 = vector.load %arg10[%c0_26, %c0_27, %c0_28] : memref<1x17x1xf32, #tpu.memory_space<vmem>>, vector<1x17x1xf32>
    tpu.vector_store %arg10[%c0_26, %c0_27, %c0_28], %35 {strides = array<i32>} : memref<1x17x1xf32, #tpu.memory_space<vmem>>, vector<1x17x1xf32>,
    %c0_29 = arith.constant 0 : index
    %c0_30 = arith.constant 0 : index
    %c0_31 = arith.constant 0 : index
    %37 = vector.load %arg11[%c0_29, %c0_30, %c0_31] : memref<1x17x1xf32, #tpu.memory_space<vmem>>, vector<1x17x1xf32>
    %cst_32 = arith.constant dense<0.000000e+00> : vector<17x1xf32>
    %38 = vector.multi_reduction <add>, %31, %cst_32 [0] : vector<8x17x1xf32> to vector<17x1xf32>
    %39 = vector.shape_cast %38 : vector<17x1xf32> to vector<1x17x1xf32>
    %40 = arith.addf %37, %39 : vector<1x17x1xf32>
    %c0_33 = arith.constant 0 : index
    %c0_34 = arith.constant 0 : index
    %c0_35 = arith.constant 0 : index
    %41 = vector.load %arg11[%c0_33, %c0_34, %c0_35] : memref<1x17x1xf32, #tpu.memory_space<vmem>>, vector<1x17x1xf32>
    tpu.vector_store %arg11[%c0_33, %c0_34, %c0_35], %40 {strides = array<i32>} : memref<1x17x1xf32, #tpu.memory_space<vmem>>, vector<1x17x1xf32>,
    %c0_i32_36 = arith.constant 0 : i32
    %42 = arith.cmpi eq, %arg1, %c0_i32_36 : i32
    %43 = arith.extui %42 : i1 to i32
    %c0_i32_37 = arith.constant 0 : i32
    %44 = arith.cmpi ne, %43, %c0_i32_37 : i32
    scf.if %44 {
      %c0_38 = arith.constant 0 : index
      %c0_39 = arith.constant 0 : index
      %c0_40 = arith.constant 0 : index
      %45 = vector.load %arg10[%c0_38, %c0_39, %c0_40] : memref<1x17x1xf32, #tpu.memory_space<vmem>>, vector<1x17x1xf32>
      %46 = vector.shape_cast %45 : vector<1x17x1xf32> to vector<1x1x17x1xf32>
      %cst_41 = arith.constant dense<0.000000e+00> : vector<1xf32>
      %47 = vector.multi_reduction <add>, %46, %cst_41 [1, 2, 3] : vector<1x1x17x1xf32> to vector<1xf32>
      %48 = vector.shape_cast %47 : vector<1xf32> to vector<1x1x1x1xf32>
      %49 = vector.extract %48[0, 0, 0, 0] : f32 from vector<1x1x1x1xf32>
      %c0_42 = arith.constant 0 : index
      %c0_43 = arith.constant 0 : index
      %c0_44 = arith.constant 0 : index
      %50 = memref.load %arg8[%c0_42, %c0_43, %c0_44] : memref<1x1x1xf32, #tpu.memory_space<smem>>
      memref.store %49, %arg8[%c0_42, %c0_43, %c0_44] : memref<1x1x1xf32, #tpu.memory_space<smem>>
      %c0_45 = arith.constant 0 : index
      %c0_46 = arith.constant 0 : index
      %c0_47 = arith.constant 0 : index
      %51 = vector.load %arg11[%c0_45, %c0_46, %c0_47] : memref<1x17x1xf32, #tpu.memory_space<vmem>>, vector<1x17x1xf32>
      %52 = vector.shape_cast %51 : vector<1x17x1xf32> to vector<1x1x17x1xf32>
      %cst_48 = arith.constant dense<0.000000e+00> : vector<1xf32>
      %53 = vector.multi_reduction <add>, %52, %cst_48 [1, 2, 3] : vector<1x1x17x1xf32> to vector<1xf32>
      %54 = vector.shape_cast %53 : vector<1xf32> to vector<1x1x1x1xf32>
      %55 = vector.extract %54[0, 0, 0, 0] : f32 from vector<1x1x1x1xf32>
      %c0_49 = arith.constant 0 : index
      %c0_50 = arith.constant 0 : index
      %c0_51 = arith.constant 0 : index
      %56 = memref.load %arg9[%c0_49, %c0_50, %c0_51] : memref<1x1x1xf32, #tpu.memory_space<smem>>
      memref.store %55, %arg9[%c0_49, %c0_50, %c0_51] : memref<1x1x1xf32, #tpu.memory_space<smem>>
    } else {
    }
    return
  }
  func.func @transform_0(%arg0: i32, %arg1: i32) -> (i32, i32, i32) {
    %c1_i32 = arith.constant 1 : i32
    %0 = arith.muli %arg0, %c1_i32 : i32
    %1 = arith.addi %0, %arg1 : i32
    %c0_i32 = arith.constant 0 : i32
    %c0_i32_0 = arith.constant 0 : i32
    %c0_i32_1 = arith.constant 0 : i32
    return %1, %c0_i32, %c0_i32_0 : i32, i32, i32
  }
  func.func @transform_1(%arg0: i32, %arg1: i32) -> (i32, i32, i32) {
    %c1_i32 = arith.constant 1 : i32
    %0 = arith.muli %arg0, %c1_i32 : i32
    %1 = arith.addi %0, %arg1 : i32
    %c0_i32 = arith.constant 0 : i32
    %c0_i32_0 = arith.constant 0 : i32
    %c0_i32_1 = arith.constant 0 : i32
    return %1, %c0_i32, %c0_i32_0 : i32, i32, i32
  }
  func.func @transform_2(%arg0: i32, %arg1: i32) -> (i32, i32, i32) {
    %c1_i32 = arith.constant 1 : i32
    %0 = arith.muli %arg0, %c1_i32 : i32
    %1 = arith.addi %0, %arg1 : i32
    %c0_i32 = arith.constant 0 : i32
    %c0_i32_0 = arith.constant 0 : i32
    %c0_i32_1 = arith.constant 0 : i32
    return %1, %c0_i32, %c0_i32_0 : i32, i32, i32
  }
  func.func @transform_3(%arg0: i32, %arg1: i32) -> (i32, i32, i32) {
    %c1_i32 = arith.constant 1 : i32
    %0 = arith.muli %arg0, %c1_i32 : i32
    %1 = arith.addi %0, %arg1 : i32
    %c0_i32 = arith.constant 0 : i32
    %c0_i32_0 = arith.constant 0 : i32
    %c0_i32_1 = arith.constant 0 : i32
    return %1, %c0_i32, %c0_i32_0 : i32, i32, i32
  }
  func.func @transform_4(%arg0: i32, %arg1: i32) -> (i32, i32, i32) {
    %c1_i32 = arith.constant 1 : i32
    %0 = arith.muli %arg0, %c1_i32 : i32
    %1 = arith.addi %0, %arg1 : i32
    %c0_i32 = arith.constant 0 : i32
    %c0_i32_0 = arith.constant 0 : i32
    %c0_i32_1 = arith.constant 0 : i32
    return %1, %c0_i32, %c0_i32_0 : i32, i32, i32
  }
  func.func @transform_5(%arg0: i32, %arg1: i32) -> (i32, i32, i32) {
    %c0_i32 = arith.constant 0 : i32
    %c0_i32_0 = arith.constant 0 : i32
    %c0_i32_1 = arith.constant 0 : i32
    %c0_i32_2 = arith.constant 0 : i32
    return %c0_i32, %c0_i32_0, %c0_i32_1 : i32, i32, i32
  }
  func.func @transform_6(%arg0: i32, %arg1: i32) -> (i32, i32, i32) {
    %c0_i32 = arith.constant 0 : i32
    %c0_i32_0 = arith.constant 0 : i32
    %c0_i32_1 = arith.constant 0 : i32
    return %arg0, %c0_i32, %c0_i32_0 : i32, i32, i32
  }
  func.func @transform_7(%arg0: i32, %arg1: i32) -> (i32, i32, i32) {
    %c0_i32 = arith.constant 0 : i32
    %c0_i32_0 = arith.constant 0 : i32
    %c0_i32_1 = arith.constant 0 : i32
    return %arg0, %c0_i32, %c0_i32_0 : i32, i32, i32
  }
}

</mosaic_0001>

<bundles_post_ra>
// kernel: tpu_custom_call.1
= control target key start
LH: loop header
LB: loop body
LE: loop exit
PB: predicated region body
PF: predicated region fallthrough
CT: control target
= control target key end

     0   :  { %13 = vsyncpa [#allocation5], 0  ;;  %vm283_vm0 = vcmask 15360   ;;  %vm290_vm1 = vcmask 8192   ;;  %s1481_s0 = inlined_call_operand.vmem [shape: f32[8,17,3], index: 0, kind: input, shape index: {}]   ;;  %s1482_s1 = inlined_call_operand.vmem [shape: f32[8,17,2], index: 1, kind: input, shape index: {}]   ;;  %s1483_s2 = inlined_call_operand.vmem [shape: f32[8,17,1], index: 2, kind: input, shape index: {}]   ;;  %s1484_s3 = inlined_call_operand.vmem [shape: f32[8,1,1], index: 3, kind: input, shape index: {}]   ;;  %s1485_s4 = inlined_call_operand.vmem [shape: f32[8,1,1], index: 4, kind: input, shape index: {}]   ;;  %s1486_s5 = inlined_call_operand.vmem [shape: f32[1,17,1], index: 5, kind: input, shape index: {}]   ;;  %s1487_s6 = inlined_call_operand.hbm [shape: f32[1,1,1], index: 6, kind: output, shape index: {0}]   ;;  %s1488_s7 = inlined_call_operand.hbm [shape: f32[1,1,1], index: 7, kind: output, shape index: {1}]  }
   0x1   :  { %v155_v0 = vld [vmem:[%s1481_s0 + $0x18] sm:$0xff]  ;;  %v152_v2 = vld [vmem:[%s1481_s0] sm:$0xff]  ;;  %v153_v9 = vld [vmem:[%s1481_s0 + $0x8] sm:$0xff] }
   0x2   :  { %v179_v1 = vld [vmem:[%s1482_s1 + $0x18] sm:$0xff]  ;;  %v176_v4 = vld [vmem:[%s1482_s1] sm:$0xff]  ;;  %v177_v10 = vld [vmem:[%s1482_s1 + $0x8] sm:$0xff] }
   0x3   :  { %v238_v3 = vsub.f32 %v155_v0, %v179_v1  ;;  %v156_v5 = vld [vmem:[%s1481_s0 + $0x20] sm:$0xff]  ;;  %v235_v7 = vsub.f32 %v152_v2, %v176_v4  ;;  %v157_v11 = vld [vmem:[%s1481_s0 + $0x28] sm:$0x1]  ;;  %v236_v13 = vsub.f32 %v153_v9, %v177_v10  ;;  %v154_v15 = vld [vmem:[%s1481_s0 + $0x10] sm:$0x1] }
   0x4   :  { %v180_v6 = vld [vmem:[%s1482_s1 + $0x20] sm:$0xff]  ;;  %v181_v14 = vld [vmem:[%s1482_s1 + $0x28] sm:$0x1]  ;;  %v178_v16 = vld [vmem:[%s1482_s1 + $0x10] sm:$0x1] }
   0x5   :  { %v239_v8 = vsub.f32 %v156_v5, %v180_v6  ;;  %v262_v12 = vmul.f32 %v238_v3, %v238_v3  ;;  %v259_v17 = vmul.f32 %v235_v7, %v235_v7  ;;  %v240_v19 = vsub.f32 %v157_v11, %v181_v14  ;;  %v159_v21 = vld [vmem:[%s1481_s0 + $0x38] sm:$0xff]  ;;  %v158_v25 = vld [vmem:[%s1481_s0 + $0x30] sm:$0xff]  ;;  %v161_v34 = vld [vmem:[%s1481_s0 + $0x48] sm:$0xff] }
   0x6   :  { %v237_v20 = vsub.f32 %v154_v15, %v178_v16  ;;  %v183_v22 = vld [vmem:[%s1482_s1 + $0x38] sm:$0xff]  ;;  %v260_v24 = vmul.f32 %v236_v13, %v236_v13  ;;  %v182_v26 = vld [vmem:[%s1482_s1 + $0x30] sm:$0xff]  ;;  %v185_v35 = vld [vmem:[%s1482_s1 + $0x48] sm:$0xff] }
   0x7   :  { %v263_v18 = vmul.f32 %v239_v8, %v239_v8  ;;  %v294_v23 = vsel %vm283_vm0, %v262_v12, 0.0  ;;  %v284_v27 = vsel %vm283_vm0, %v259_v17, 0.0  ;;  %v264_v29 = vmul.f32 %v240_v19, %v240_v19  ;;  %v160_v36 = vld [vmem:[%s1481_s0 + $0x40] sm:$0x1]  ;;  %v163_v44 = vld [vmem:[%s1481_s0 + $0x58] sm:$0x1] }
   0x8   :  { %295 = vadd.xlane.f32.xlu1 %v294_v23  ;;  %285 = vadd.xlane.f32.xlu0 %v284_v27  ;;  %v242_v30 = vsub.f32 %v159_v21, %v183_v22  ;;  %v287_v31 = vsel %vm283_vm0, %v260_v24, 0.0  ;;  %v261_v32 = vmul.f32 %v237_v20, %v237_v20  ;;  %v241_v33 = vsub.f32 %v158_v25, %v182_v26  ;;  %v184_v37 = vld [vmem:[%s1482_s1 + $0x40] sm:$0x1]  ;;  %v187_v45 = vld [vmem:[%s1482_s1 + $0x58] sm:$0x1]  ;;  %v162_v46 = vld [vmem:[%s1481_s0 + $0x50] sm:$0xff] }
   0x9   :  { %v297_v28 = vsel %vm283_vm0, %v263_v18, 0.0  ;;  %v300_v38 = vsel %vm290_vm1, %v264_v29, 0.0  ;;  %v244_v40 = vsub.f32 %v161_v34, %v185_v35  ;;  %v243_v43 = vsub.f32 %v160_v36, %v184_v37  ;;  %v186_v47 = vld [vmem:[%s1482_s1 + $0x50] sm:$0xff]  ;;  %v165_v54 = vld [vmem:[%s1481_s0 + $0x68] sm:$0xff]  ;;  %v164_v56 = vld [vmem:[%s1481_s0 + $0x60] sm:$0xff] }
   0xa   :  { %v266_v39 = vmul.f32 %v242_v30, %v242_v30  ;;  %v291_v41 = vsel %vm290_vm1, %v261_v32, 0.0  ;;  %v265_v42 = vmul.f32 %v241_v33, %v241_v33  ;;  %v246_v50 = vsub.f32 %v163_v44, %v187_v45  ;;  %v189_v55 = vld [vmem:[%s1482_s1 + $0x68] sm:$0xff]  ;;  %v188_v57 = vld [vmem:[%s1482_s1 + $0x60] sm:$0xff]  ;;  %v167_v0 = vld [vmem:[%s1481_s0 + $0x78] sm:$0xff] }
   0xb   :  { %v268_v49 = vmul.f32 %v244_v40, %v244_v40  ;;  %v267_v52 = vmul.f32 %v243_v43, %v243_v43  ;;  %v245_v53 = vsub.f32 %v162_v46, %v186_v47  ;;  %v248_v60 = vsub.f32 %v165_v54, %v189_v55  ;;  %v191_v1 = vld [vmem:[%s1482_s1 + $0x78] sm:$0xff]  ;;  %v166_v2 = vld [vmem:[%s1481_s0 + $0x70] sm:$0x1] }
   0xc   :  { %298 = vadd.xlane.f32.xlu1 %v297_v28  ;;  %288 = vadd.xlane.f32.xlu0 %v287_v31  ;;  %v306_v48 = vsel %vm283_vm0, %v266_v39, 0.0  ;;  %v303_v51 = vsel %vm283_vm0, %v265_v42, 0.0  ;;  %v270_v59 = vmul.f32 %v246_v50, %v246_v50  ;;  %v247_v63 = vsub.f32 %v164_v56, %v188_v57  ;;  %v190_v3 = vld [vmem:[%s1482_s1 + $0x70] sm:$0x1] }
   0xd   :  { %v312_v58 = vsel %vm283_vm0, %v268_v49, 0.0  ;;  %v309_v61 = vsel %vm290_vm1, %v267_v52, 0.0  ;;  %v269_v62 = vmul.f32 %v245_v53, %v245_v53 }
  0x10   :  { %301 = vadd.xlane.f32.xlu1 %v300_v38  ;;  %292 = vadd.xlane.f32.xlu0 %v291_v41 }
  0x14   :  { %307 = vadd.xlane.f32.xlu1 %v306_v48  ;;  %304 = vadd.xlane.f32.xlu0 %v303_v51 }
  0x15   :  { %14 = vsyncpa [#allocation7], 0  ;;  %vm144_vm2 = vcmask 7168   ;;  %v318_v4 = vsel %vm290_vm1, %v270_v59, 0.0  ;;  %v272_v5 = vmul.f32 %v248_v60, %v248_v60  ;;  %v250_v6 = vsub.f32 %v167_v0, %v191_v1  ;;  %v169_v11 = vld [vmem:[%s1481_s0 + $0x88] sm:$0x1] }
  0x16   :  { %v927_v7 = vmov 0.0   ;;  %v315_v8 = vsel %vm283_vm0, %v269_v62, 0.0  ;;  %v271_v9 = vmul.f32 %v247_v63, %v247_v63  ;;  %v249_v10 = vsub.f32 %v166_v2, %v190_v3  ;;  %v193_v12 = vld [vmem:[%s1482_s1 + $0x88] sm:$0x1]  ;;  %v168_v13 = vld [vmem:[%s1481_s0 + $0x80] sm:$0xff]  ;;  %v171_v21 = vld [vmem:[%s1481_s0 + $0x98] sm:$0xff] }
  0x17   :  { %145 = vst.msk [vmem:[#allocation2] sm:$0xff] %vm144_vm2, %v927_v7  ;;  %146 = vst.msk [vmem:[#allocation2 + $0x8] sm:$0xff] %vm144_vm2, %v927_v7  ;;  %v192_v14 = vld [vmem:[%s1482_s1 + $0x80] sm:$0xff]  ;;  %v324_v15 = vsel %vm283_vm0, %v272_v5, 0.0  ;;  %v274_v16 = vmul.f32 %v250_v6, %v250_v6  ;;  %v252_v17 = vsub.f32 %v169_v11, %v193_v12  ;;  %v195_v22 = vld [vmem:[%s1482_s1 + $0x98] sm:$0xff]  ;;  %vm147_vm3 = vcmask 0  }
  0x18   :  { %313 = vadd.xlane.f32.xlu1 %v312_v58  ;;  %310 = vadd.xlane.f32.xlu0 %v309_v61  ;;  %149 = vst.msk [vmem:[#allocation3] sm:$0xff] %vm144_vm2, %v927_v7  ;;  %150 = vst.msk [vmem:[#allocation3 + $0x8] sm:$0xff] %vm144_vm2, %v927_v7  ;;  %v321_v18 = vsel %vm283_vm0, %v271_v9, 0.0  ;;  %v273_v19 = vmul.f32 %v249_v10, %v249_v10  ;;  %v251_v20 = vsub.f32 %v168_v13, %v192_v14  ;;  %v170_v23 = vld [vmem:[%s1481_s0 + $0x90] sm:$0xff]  ;;  %v173_v31 = vld [vmem:[%s1481_s0 + $0xa8] sm:$0xff]  ;;  %s928_s15 = smov [#allocation4]  }
  0x19   :  { %v194_v24 = vld [vmem:[%s1482_s1 + $0x90] sm:$0xff]  ;;  %v330_v25 = vsel %vm283_vm0, %v274_v16, 0.0  ;;  %v276_v26 = vmul.f32 %v252_v17, %v252_v17  ;;  %v254_v27 = vsub.f32 %v171_v21, %v195_v22  ;;  %v197_v32 = vld [vmem:[%s1482_s1 + $0xa8] sm:$0xff]  ;;  %v172_v33 = vld [vmem:[%s1481_s0 + $0xa0] sm:$0x1]  ;;  %s929_s18 = smov [#allocation6]  }
  0x1a   :  { %v327_v28 = vsel %vm290_vm1, %v273_v19, 0.0  ;;  %v275_v29 = vmul.f32 %v251_v20, %v251_v20  ;;  %v253_v30 = vsub.f32 %v170_v23, %v194_v24  ;;  %v196_v34 = vld [vmem:[%s1482_s1 + $0xa0] sm:$0x1]  ;;  %v256_v37 = vsub.f32 %v173_v31, %v197_v32  ;;  %v175_v38 = vld [vmem:[%s1481_s0 + $0xb8] sm:$0x1]  ;;  %v174_v43 = vld [vmem:[%s1481_s0 + $0xb0] sm:$0xff] }
  0x1b   :  { %v336_v35 = vsel %vm290_vm1, %v276_v26, 0.0  ;;  %v278_v36 = vmul.f32 %v254_v27, %v254_v27  ;;  %v255_v41 = vsub.f32 %v172_v33, %v196_v34  ;;  %v199_v42 = vld [vmem:[%s1482_s1 + $0xb8] sm:$0x1]  ;;  %v198_v44 = vld [vmem:[%s1482_s1 + $0xb0] sm:$0xff]  ;;  %148 = vst.msk [vmem:[#allocation2 + $0x10] sm:$0x1] %vm147_vm3, %v927_v7 }
  0x1c   :  { %319 = vadd.xlane.f32.xlu1 %v318_v4  ;;  %316 = vadd.xlane.f32.xlu0 %v315_v8  ;;  %v333_v39 = vsel %vm283_vm0, %v275_v29, 0.0  ;;  %v277_v40 = vmul.f32 %v253_v30, %v253_v30  ;;  %v280_v46 = vmul.f32 %v256_v37, %v256_v37  ;;  %v258_v47 = vsub.f32 %v175_v38, %v199_v42  ;;  %v1151_v55 = vld [vmem:[%s1483_s2 + $0x18] sm:$0xff]  ;;  %v1156_v56 = vld [vmem:[%s1483_s2] sm:$0xff]  ;;  %v1170_v60 = vld [vmem:[%s1483_s2 + $0x8] sm:$0xff] }
  0x1d   :  { %v342_v45 = vsel %vm283_vm0, %v278_v36, 0.0  ;;  %v257_v48 = vsub.f32 %v174_v43, %v198_v44  ;;  %v279_v50 = vmul.f32 %v255_v41, %v255_v41  ;;  %151 = vst.msk [vmem:[#allocation3 + $0x10] sm:$0x1] %vm147_vm3, %v927_v7  ;;  %vm585_vm4 = vcmp.ne.f32.partialorder %v1151_v55, 0.0  ;;  %v1165_v59 = vld [vmem:[%s1483_s2 + $0x20] sm:$0xff]  ;;  %v1191_v1 = vld [vmem:[%s1483_s2 + $0x30] sm:$0xff] }
  0x1e   :  { %v339_v49 = vsel %vm283_vm0, %v277_v40, 0.0  ;;  %v348_v51 = vsel %vm283_vm0, %v280_v46, 0.0  ;;  %v282_v52 = vmul.f32 %v258_v47, %v258_v47  ;;  %vm582_vm5 = vcmp.ne.f32.partialorder %v1156_v56, 0.0  ;;  %v1177_v61 = vld [vmem:[%s1483_s2 + $0x28] sm:$0x1]  ;;  %v1201_v6 = vld [vmem:[%s1483_s2 + $0x38] sm:$0xff] }
  0x1f   :  { %v281_v53 = vmul.f32 %v257_v48, %v257_v48  ;;  %v345_v54 = vsel %vm290_vm1, %v279_v50, 0.0  ;;  %vm586_vm6 = vcmp.ne.f32.partialorder %v1165_v59, 0.0  ;;  %vm583_vm7 = vcmp.ne.f32.partialorder %v1170_v60, 0.0  ;;  %v1182_v62 = vld [vmem:[%s1483_s2 + $0x10] sm:$0x1]  ;;  %v1212_v13 = vld [vmem:[%s1483_s2 + $0x48] sm:$0xff] }
  0x20   :  { %325 = vadd.xlane.f32.xlu1 %v324_v15  ;;  %322 = vadd.xlane.f32.xlu0 %v321_v18  ;;  %v354_v57 = vsel %vm290_vm1, %v282_v52, 0.0  ;;  %vm587_vm8 = vcmp.ne.f32.partialorder %v1177_v61, 0.0  ;;  %vm584_vm9 = vcmp.ne.f32.partialorder %v1182_v62, 0.0  ;;  %v609_v63 = vsel %vm585_vm4, 1.0, %v927_v7  ;;  %v1217_v14 = vld [vmem:[%s1483_s2 + $0x40] sm:$0x1] }
  0x21   :  { %v351_v58 = vsel %vm283_vm0, %v281_v53, 0.0  ;;  %v606_v0 = vsel %vm582_vm5, 1.0, %v927_v7  ;;  %v610_v2 = vsel %vm586_vm6, 1.0, %v927_v7  ;;  %v607_v3 = vsel %vm583_vm7, 1.0, %v927_v7  ;;  %v1228_v20 = vld [vmem:[%s1483_s2 + $0x58] sm:$0x1] }
  0x22   :  { %vm588_vm10 = vcmp.ne.f32.partialorder %v1191_v1, 0.0  ;;  %v611_v4 = vsel %vm587_vm8, 1.0, %v927_v7  ;;  %v608_v5 = vsel %vm584_vm9, 1.0, %v927_v7  ;;  %v690_v8 = vsel %vm144_vm2, %v609_v63, 0.0  ;;  %v1246_v31 = vld [vmem:[%s1483_s2 + $0x68] sm:$0xff]  ;;  %v1263_v41 = vld [vmem:[%s1483_s2 + $0x78] sm:$0xff] }
  0x23   :  { %v689_v9 = vsel %vm144_vm2, %v606_v0, 0.0  ;;  %vm589_vm11 = vcmp.ne.f32.partialorder %v1201_v6, 0.0  ;;  %v705_v10 = vsel %vm144_vm2, %v610_v2, 0.0  ;;  %v704_v11 = vsel %vm144_vm2, %v607_v3, 0.0  ;;  %v1271_v46 = vld [vmem:[%s1483_s2 + $0x70] sm:$0x1] }
  0x24   :  { %331 = vadd.xlane.f32.xlu1 %v330_v25  ;;  %328 = vadd.xlane.f32.xlu0 %v327_v28  ;;  %v612_v12 = vsel %vm588_vm10, 1.0, %v927_v7  ;;  %v720_v15 = vsel %vm147_vm3, %v611_v4, 0.0  ;;  %v719_v16 = vsel %vm147_vm3, %v608_v5, 0.0  ;;  %vm591_vm12 = vcmp.ne.f32.partialorder %v1212_v13, 0.0  ;;  %v1236_v25 = vld [vmem:[%s1483_s2 + $0x50] sm:$0xff]  ;;  %v1296_v3 = vld [vmem:[%s1483_s2 + $0x98] sm:$0xff] }
  0x25   :  { %vm590_vm13 = vcmp.ne.f32.partialorder %v1217_v14, 0.0  ;;  %v691_v17 = vadd.f32 %v690_v8, %v689_v9  ;;  %v613_v18 = vsel %vm589_vm11, 1.0, %v927_v7  ;;  %v692_v21 = vsel %vm144_vm2, %v612_v12, 0.0  ;;  %v1279_v50 = vld [vmem:[%s1483_s2 + $0x88] sm:$0x1]  ;;  %v1301_v4 = vld [vmem:[%s1483_s2 + $0x90] sm:$0xff] }
  0x26   :  { %v614_v19 = vsel %vm590_vm13, 1.0, %v927_v7  ;;  %vm593_vm14 = vcmp.ne.f32.partialorder %v1228_v20, 0.0  ;;  %v706_v22 = vadd.f32 %v705_v10, %v704_v11  ;;  %v721_v23 = vadd.f32 %v720_v15, %v719_v16  ;;  %v1311_v12 = vld [vmem:[%s1483_s2 + $0xa8] sm:$0xff]  ;;  %v1316_v15 = vld [vmem:[%s1483_s2 + $0xa0] sm:$0x1]  ;;  %v1321_v16 = vld [vmem:[%s1483_s2 + $0xb0] sm:$0xff] }
  0x27   :  { %v615_v24 = vsel %vm591_vm12, 1.0, %v927_v7  ;;  %v707_v26 = vsel %vm144_vm2, %v613_v18, 0.0  ;;  %v722_v27 = vsel %vm147_vm3, %v614_v19, 0.0  ;;  %vm592_vm15 = vcmp.ne.f32.partialorder %v1236_v25, 0.0 }
  0x28   :  { %337 = vadd.xlane.f32.xlu1 %v336_v35  ;;  %334 = vadd.xlane.f32.xlu0 %v333_v39  ;;  %v693_v28 = vadd.f32 %v692_v21, %v691_v17  ;;  %v617_v29 = vsel %vm593_vm14, 1.0, %v927_v7  ;;  %v616_v30 = vsel %vm592_vm15, 1.0, %v927_v7  ;;  %v694_v32 = vsel %vm144_vm2, %v615_v24, 0.0  ;;  %v1253_v35 = vld [vmem:[%s1483_s2 + $0x60] sm:$0xff]  ;;  %v1332_v24 = vld [vmem:[%s1483_s2 + $0xb8] sm:$0x1] }
  0x29   :  { %vm595_vm0 = vcmp.ne.f32.partialorder %v1246_v31, 0.0  ;;  %v708_v33 = vadd.f32 %v707_v26, %v706_v22  ;;  %v723_v34 = vadd.f32 %v722_v27, %v721_v23  ;;  %v724_v36 = vsel %vm147_vm3, %v617_v29, 0.0 }
  0x2a   :  { %v709_v37 = vsel %vm144_vm2, %v616_v30, 0.0  ;;  %vm594_vm1 = vcmp.ne.f32.partialorder %v1253_v35, 0.0  ;;  %v695_v38 = vadd.f32 %v694_v32, %v693_v28  ;;  %v619_v39 = vsel %vm595_vm0, 1.0, %v927_v7 }
  0x2b   :  { %v618_v40 = vsel %vm594_vm1, 1.0, %v927_v7  ;;  %vm597_vm4 = vcmp.ne.f32.partialorder %v1263_v41, 0.0  ;;  %v725_v43 = vadd.f32 %v724_v36, %v723_v34  ;;  %v710_v44 = vadd.f32 %v709_v37, %v708_v33  ;;  %v686_v33 = vld [vmem:[#allocation3] sm:$0xff]  ;;  %v687_v36 = vld [vmem:[#allocation3 + $0x8] sm:$0xff] }
  0x2c   :  { %343 = vadd.xlane.f32.xlu1 %v342_v45  ;;  %340 = vadd.xlane.f32.xlu0 %v339_v49  ;;  %v696_v42 = vsel %vm144_vm2, %v618_v40, 0.0  ;;  %v621_v45 = vsel %vm597_vm4, 1.0, %v927_v7  ;;  %v711_v47 = vsel %vm144_vm2, %v619_v39, 0.0  ;;  %vm596_vm5 = vcmp.ne.f32.partialorder %v1271_v46, 0.0 }
  0x2d   :  { %v697_v48 = vadd.f32 %v696_v42, %v695_v38  ;;  %v620_v49 = vsel %vm596_vm5, 1.0, %v927_v7  ;;  %vm599_vm6 = vcmp.ne.f32.partialorder %v1279_v50, 0.0  ;;  %v712_v53 = vadd.f32 %v711_v47, %v710_v44  ;;  %v688_v42 = vld [vmem:[#allocation3 + $0x10] sm:$0x1] }
  0x2e   :  { %v726_v52 = vsel %vm147_vm3, %v620_v49, 0.0  ;;  %vm601_vm8 = vcmp.ne.f32.partialorder %v1296_v3, 0.0  ;;  %vm600_vm9 = vcmp.ne.f32.partialorder %v1301_v4, 0.0  ;;  %vm603_vm10 = vcmp.ne.f32.partialorder %v1311_v12, 0.0 }
  0x2f   :  { %v625_v10 = vsel %vm601_vm8, 1.0, %v927_v7  ;;  %v624_v11 = vsel %vm600_vm9, 1.0, %v927_v7  ;;  %vm602_vm11 = vcmp.ne.f32.partialorder %v1316_v15, 0.0  ;;  %v627_v22 = vsel %vm603_vm10, 1.0, %v927_v7 }
  0x30   :  { %349 = vadd.xlane.f32.xlu1 %v348_v51  ;;  %346 = vadd.xlane.f32.xlu0 %v345_v54  ;;  %v698_v51 = vsel %vm144_vm2, %v621_v45, 0.0  ;;  %v727_v54 = vadd.f32 %v726_v52, %v725_v43  ;;  %v715_v17 = vsel %vm144_vm2, %v625_v10, 0.0  ;;  %v700_v18 = vsel %vm144_vm2, %v624_v11, 0.0  ;;  %v226_v11 = vld [vmem:[%s1484_s3 + $0x2] sm:$0x1] }
  0x31   :  { %v699_v0 = vadd.f32 %v698_v51, %v697_v48  ;;  %v626_v23 = vsel %vm602_vm11, 1.0, %v927_v7  ;;  %v702_v26 = vsel %vm144_vm2, %v627_v22, 0.0  ;;  %vm605_vm12 = vcmp.ne.f32.partialorder %v1332_v24, 0.0 }
  0x32   :  { %v730_v27 = vsel %vm147_vm3, %v626_v23, 0.0  ;;  %vm604_vm13 = vcmp.ne.f32.partialorder %v1321_v16, 0.0  ;;  %v629_v30 = vsel %vm605_vm12, 1.0, %v927_v7 }
  0x33   :  { %v701_v21 = vadd.f32 %v700_v18, %v699_v0  ;;  %v628_v32 = vsel %vm604_vm13, 1.0, %v927_v7  ;;  %v732_v34 = vsel %vm147_vm3, %v629_v30, 0.0  ;;  %v368_v18 = vadd.f32 1e-09, %v226_v11  ;;  %v229_v30 = vld [vmem:[%s1484_s3 + $0x5] sm:$0x1] }
  0x34   :  { %355 = vadd.xlane.f32.xlu1 %v354_v57  ;;  %352 = vadd.xlane.f32.xlu0 %v351_v58  ;;  %v623_v57 = vsel %vm599_vm6, 1.0, %v927_v7  ;;  %v1288_v58 = vld [vmem:[%s1483_s2 + $0x80] sm:$0xff]  ;;  %v717_v37 = vsel %vm144_vm2, %v628_v32, 0.0 }
  0x35   :  { %v728_v63 = vsel %vm147_vm3, %v623_v57, 0.0  ;;  %vm598_vm7 = vcmp.ne.f32.partialorder %v1288_v58, 0.0  ;;  %v703_v28 = vadd.f32 %v702_v26, %v701_v21  ;;  %v225_v57 = vld [vmem:[%s1484_s3 + $0x1] sm:$0x1]  ;;  %v398_v21 = vlaneseq  ;;  %v228_v26 = vld [vmem:[%s1484_s3 + $0x4] sm:$0x1] }
  0x36   :  { %v622_v2 = vsel %vm598_vm7, 1.0, %v927_v7  ;;  %v729_v8 = vadd.f32 %v728_v63, %v727_v54  ;;  %v232_v54 = vld [vmem:[%s1486_s5] sm:$0xff] }
  0x37   :  { %v713_v5 = vsel %vm144_vm2, %v622_v2, 0.0  ;;  %v734_v38 = vadd.f32 %v703_v28, %v686_v33  ;;  %v224_v63 = vld [vmem:[%s1484_s3] sm:$0x1]  ;;  %v357_v0 = vmul.f32 %v232_v54, %v232_v54  ;;  %v367_v2 = vadd.f32 1e-09, %v225_v57 }
  0x38   :  { %v714_v9 = vadd.f32 %v713_v5, %v712_v53  ;;  %v731_v29 = vadd.f32 %v730_v27, %v729_v8  ;;  %v366_v5 = vadd.f32 1e-09, %v224_v63  ;;  %v233_v8 = vld [vmem:[%s1486_s5 + $0x8] sm:$0xff]  ;;  %v399_v23 = vshrl.u32 %v398_v21, 7 }
  0x39   :  { %737 = vst.msk [vmem:[#allocation3] sm:$0xff] %vm144_vm2, %v734_v38  ;;  %837 = vrcp.f32 %v357_v0  ;;  %v358_v10 = vmul.f32 %v233_v8, %v233_v8  ;;  %v231_v8 = vld [vmem:[%s1484_s3 + $0x7] sm:$0x1] }
  0x3a   :  { %v716_v19 = vadd.f32 %v715_v17, %v714_v9  ;;  %v733_v39 = vadd.f32 %v732_v34, %v731_v29  ;;  %v234_v9 = vld [vmem:[%s1486_s5 + $0x10] sm:$0x1]  ;;  %839 = vrcp.f32 %v367_v2  ;;  %v1372_v28 = vsub.s32 0, %v399_v23 }
  0x3b   :  { %841 = vrcp.f32 %v366_v5  ;;  %v359_v17 = vmul.f32 %v234_v9, %v234_v9  ;;  %v370_v29 = vadd.f32 1e-09, %v228_v26 }
  0x3c   :  { %v718_v40 = vadd.f32 %v717_v37, %v716_v19  ;;  %v736_v43 = vadd.f32 %v733_v39, %v688_v42  ;;  %v227_v19 = vld [vmem:[%s1484_s3 + $0x3] sm:$0x1]  ;;  %843 = vrcp.f32 %v358_v10  ;;  %v371_v37 = vadd.f32 1e-09, %v229_v30 }
  0x3d   :  { %845 = vrcp.f32 %v359_v17  ;;  %v369_v22 = vadd.f32 1e-09, %v227_v19 }
  0x3e   :  { %v735_v44 = vadd.f32 %v718_v40, %v687_v36  ;;  %739 = vst.msk [vmem:[#allocation3 + $0x10] sm:$0x1] %vm147_vm3, %v736_v43  ;;  %847 = vrcp.f32 %v368_v18 }
  0x3f   :  { %849 = vrcp.f32 %v369_v22  ;;  %v373_v22 = vadd.f32 1e-09, %v231_v8 }
  0x40   :  { %738 = vst.msk [vmem:[#allocation3 + $0x8] sm:$0xff] %vm144_vm2, %v735_v44  ;;  %v762_v45 = vld [vmem:[#allocation3] sm:$0xff]  ;;  %851 = vrcp.f32 %v370_v29 }
  0x41   :  { %v765_v7 = vsel %vm144_vm2, %v762_v45, 0.0  ;;  %853 = vrcp.f32 %v371_v37 }
  0x45   :  { %v764_v48 = vld [vmem:[#allocation3 + $0x10] sm:$0x1] }
  0x46   :  { %v768_v51 = vsel %vm147_vm3, %v764_v48, 0.0  ;;  %v838_v27 = vpop.eup %837 }
  0x47   :  { %v763_v47 = vld [vmem:[#allocation3 + $0x8] sm:$0xff]  ;;  %v840_v32 = vpop.eup %839  ;;  %v1377_v38 = vmul.f32 -0.125, %v838_v27 }
  0x48   :  { %v766_v49 = vsel %vm144_vm2, %v763_v47, 0.0  ;;  %v842_v33 = vpop.eup %841  ;;  %v405_v39 = vrot.slane %v840_v32, %v1372_v28 }
  0x49   :  { %v767_v52 = vadd.f32 %v766_v49, %v765_v7  ;;  %v844_v40 = vpop.eup %843  ;;  %v401_v42 = vrot.slane %v842_v33, %v1372_v28  ;;  %v230_v49 = vld [vmem:[%s1484_s3 + $0x6] sm:$0x1] }
  0x4a   :  { %v846_v44 = vpop.eup %845  ;;  %v441_v47 = vmul.f32 %v405_v39, %v1377_v38  ;;  %v1382_v48 = vmul.f32 -0.125, %v844_v40  ;;  %v372_v0 = vadd.f32 1e-09, %v230_v49 }
  0x4b   :  { %v769_v53 = vadd.f32 %v768_v51, %v767_v52  ;;  %v848_v7 = vpop.eup %847  ;;  %v438_v51 = vmul.f32 %v401_v42, %v1377_v38  ;;  %v1388_v52 = vmul.f32 -0.125, %v846_v44 }
  0x4c   :  { %v850_v54 = vpop.eup %849  ;;  %v409_v63 = vrot.slane %v848_v7, %v1372_v28  ;;  %v442_v5 = vmul.f32 %v405_v39, %v1382_v48  ;;  %v439_v10 = vmul.f32 %v401_v42, %v1382_v48  ;;  %855 = vrcp.f32 %v372_v0 }
  0x4d   :  { %770 = vadd.xlane.f32.xlu1 %v769_v53  ;;  %v443_v11 = vmul.f32 %v405_v39, %v1388_v52  ;;  %v413_v18 = vrot.slane %v850_v54, %v1372_v28  ;;  %v440_v27 = vmul.f32 %v401_v42, %v1388_v52  ;;  %v852_v29 = vpop.eup %851  ;;  %857 = vrcp.f32 %v373_v22 }
  0x4e   :  { %v444_v19 = vmul.f32 %v409_v63, %v1377_v38  ;;  %v445_v33 = vmul.f32 %v409_v63, %v1382_v48  ;;  %v446_v40 = vmul.f32 %v409_v63, %v1388_v52  ;;  %v854_v7 = vpop.eup %853  ;;  %v417_v42 = vrot.slane %v852_v29, %v1372_v28 }
  0x59   :  { %v856_v29 = vpop.eup %855 }
  0x91   :  { %v296_v34 = vpop.xlane.xlu1 %295  ;;  %v286_v36 = vpop.xlane.xlu0 %285 }
  0x92   :  { %v465_v2 = vmul.f32 %v441_v47, %v296_v34  ;;  %v462_v9 = vmul.f32 %v438_v51, %v286_v36  ;;  %v447_v36 = vmul.f32 %v413_v18, %v1377_v38  ;;  %v449_v51 = vmul.f32 %v413_v18, %v1388_v52 }
  0x94   :  { %v492_v23 = vmul.f32 1.442695, %v465_v2  ;;  %v486_v30 = vmul.f32 1.442695, %v462_v9  ;;  %v448_v2 = vmul.f32 %v413_v18, %v1382_v48  ;;  %v421_v9 = vrot.slane %v854_v7, %v1372_v28 }
  0x95   :  { %v299_v43 = vpop.xlane.xlu1 %298  ;;  %v289_v45 = vpop.xlane.xlu0 %288 }
  0x96   :  { %v466_v26 = vmul.f32 %v442_v5, %v299_v43  ;;  %v463_v32 = vmul.f32 %v439_v10, %v289_v45  ;;  %859 = vpow2.f32 %v492_v23  ;;  %v455_v7 = vmul.f32 %v421_v9, %v1388_v52 }
  0x97   :  { %861 = vpow2.f32 %v486_v30 }
  0x98   :  { %v494_v47 = vmul.f32 1.442695, %v466_v26  ;;  %v488_v49 = vmul.f32 1.442695, %v463_v32  ;;  %v452_v32 = vmul.f32 %v417_v42, %v1388_v52 }
  0x99   :  { %v302_v53 = vpop.xlane.xlu1 %301  ;;  %v293_v57 = vpop.xlane.xlu0 %292 }
  0x9a   :  { %v467_v34 = vmul.f32 %v443_v11, %v302_v53  ;;  %v464_v43 = vmul.f32 %v440_v27, %v293_v57  ;;  %863 = vpow2.f32 %v494_v47  ;;  %v450_v57 = vmul.f32 %v417_v42, %v1377_v38 }
  0x9b   :  { %865 = vpow2.f32 %v488_v49  ;;  %v453_v27 = vmul.f32 %v421_v9, %v1377_v38  ;;  %v425_v47 = vrot.slane %v856_v29, %v1372_v28 }
  0x9c   :  { %v496_v53 = vmul.f32 1.442695, %v467_v34  ;;  %v490_v10 = vmul.f32 1.442695, %v464_v43  ;;  %v858_v43 = vpop.eup %857 }
  0x9d   :  { %v308_v17 = vpop.xlane.xlu1 %307  ;;  %v305_v21 = vpop.xlane.xlu0 %304 }
  0x9e   :  { %v468_v39 = vmul.f32 %v444_v19, %v305_v21  ;;  %v469_v45 = vmul.f32 %v445_v33, %v308_v17  ;;  %v451_v17 = vmul.f32 %v417_v42, %v1382_v48  ;;  %867 = vpow2.f32 %v496_v53 }
  0xa0   :  { %v498_v5 = vmul.f32 1.442695, %v468_v39  ;;  %v500_v11 = vmul.f32 1.442695, %v469_v45  ;;  %v454_v45 = vmul.f32 %v421_v9, %v1382_v48  ;;  %v456_v9 = vmul.f32 %v425_v47, %v1377_v38 }
  0xa1   :  { %v314_v37 = vpop.xlane.xlu1 %313  ;;  %v311_v44 = vpop.xlane.xlu0 %310 }
  0xa2   :  { %v471_v54 = vmul.f32 %v447_v36, %v314_v37  ;;  %v470_v63 = vmul.f32 %v446_v40, %v311_v44  ;;  %869 = vpow2.f32 %v498_v5 }
  0xa3   :  { %871 = vpow2.f32 %v490_v10  ;;  %v860_v42 = vpop.eup %859  ;;  %v429_v10 = vrot.slane %v858_v43, %v1372_v28  ;;  %v458_v28 = vmul.f32 %v425_v47, %v1388_v52 }
  0xa4   :  { %v504_v21 = vmul.f32 1.442695, %v471_v54  ;;  %v502_v18 = vmul.f32 1.442695, %v470_v63  ;;  %873 = vpow2.f32 %v500_v11  ;;  %v862_v54 = vpop.eup %861 }
  0xa5   :  { %v320_v0 = vpop.xlane.xlu1 %319  ;;  %v317_v8 = vpop.xlane.xlu0 %316 }
  0xa6   :  { %v473_v19 = vmul.f32 %v449_v51, %v320_v0  ;;  %v472_v22 = vmul.f32 %v448_v2, %v317_v8  ;;  %875 = vpow2.f32 %v504_v21  ;;  %v457_v8 = vmul.f32 %v425_v47, %v1382_v48 }
  0xa7   :  { %877 = vpow2.f32 %v502_v18 }
  0xa8   :  { %v508_v33 = vmul.f32 1.442695, %v473_v19  ;;  %v506_v36 = vmul.f32 1.442695, %v472_v22  ;;  %v864_v19 = vpop.eup %863 }
  0xa9   :  { %v326_v23 = vpop.xlane.xlu1 %325  ;;  %v323_v26 = vpop.xlane.xlu0 %322 }
  0xaa   :  { %v474_v30 = vmul.f32 %v450_v57, %v323_v26  ;;  %v475_v34 = vmul.f32 %v451_v17, %v326_v23  ;;  %v537_v57 = vsub.f32 1.0, %v860_v42  ;;  %v534_v17 = vsub.f32 1.0, %v862_v54  ;;  %v866_v22 = vpop.eup %865 }
  0xab   :  { %v868_v26 = vpop.eup %867 }
  0xac   :  { %v510_v37 = vmul.f32 1.442695, %v474_v30  ;;  %v512_v51 = vmul.f32 1.442695, %v475_v34  ;;  %v459_v30 = vmul.f32 %v429_v10, %v1377_v38  ;;  %v538_v34 = vsub.f32 1.0, %v864_v19 }
  0xad   :  { %v332_v39 = vpop.xlane.xlu1 %331  ;;  %v329_v44 = vpop.xlane.xlu0 %328 }
  0xae   :  { %v477_v40 = vmul.f32 %v453_v27, %v332_v39  ;;  %879 = vpow2.f32 %v510_v37  ;;  %v476_v49 = vmul.f32 %v452_v32, %v329_v44  ;;  %v558_v39 = vmul.f32 %v534_v17, %v1156_v56 }
  0xaf   :  { %881 = vpow2.f32 %v508_v33  ;;  %v870_v32 = vpop.eup %869  ;;  %v561_v33 = vmul.f32 %v537_v57, %v1151_v55  ;;  %v460_v55 = vmul.f32 %v429_v10, %v1382_v48 }
  0xb0   :  { %v516_v53 = vmul.f32 1.442695, %v477_v40  ;;  %883 = vpow2.f32 %v506_v36  ;;  %v514_v0 = vmul.f32 1.442695, %v476_v49  ;;  %v872_v37 = vpop.eup %871  ;;  %v535_v40 = vsub.f32 1.0, %v866_v22 }
  0xb1   :  { %v338_v2 = vpop.xlane.xlu1 %337  ;;  %v335_v63 = vpop.xlane.xlu0 %334  ;;  %v540_v38 = vsub.f32 1.0, %v870_v32  ;;  %v635_v54 = vsel %vm144_vm2, %v561_v33, 0.0 }
  0xb2   :  { %885 = vpow2.f32 %v516_v53  ;;  %v479_v5 = vmul.f32 %v455_v7, %v338_v2  ;;  %v478_v11 = vmul.f32 %v454_v45, %v335_v63  ;;  %v874_v7 = vpop.eup %873  ;;  %v461_v45 = vmul.f32 %v429_v10, %v1388_v52 }
  0xb3   :  { %887 = vpow2.f32 %v514_v0  ;;  %v876_v42 = vpop.eup %875  ;;  %v562_v0 = vmul.f32 %v538_v34, %v1165_v59  ;;  %v559_v63 = vmul.f32 %v535_v40, %v1170_v60  ;;  %v539_v52 = vsub.f32 1.0, %v868_v26 }
  0xb4   :  { %889 = vpow2.f32 %v512_v51  ;;  %v520_v21 = vmul.f32 1.442695, %v479_v5  ;;  %v518_v23 = vmul.f32 1.442695, %v478_v11  ;;  %v878_v53 = vpop.eup %877  ;;  %v634_v5 = vsel %vm144_vm2, %v558_v39, 0.0 }
  0xb5   :  { %v344_v18 = vpop.xlane.xlu1 %343  ;;  %v341_v29 = vpop.xlane.xlu0 %340  ;;  %v536_v11 = vsub.f32 1.0, %v872_v37  ;;  %v543_v19 = vsub.f32 1.0, %v876_v42  ;;  %v542_v22 = vsub.f32 1.0, %v878_v53 }
  0xb6   :  { %891 = vpow2.f32 %v520_v21  ;;  %v481_v27 = vmul.f32 %v457_v8, %v344_v18  ;;  %v480_v36 = vmul.f32 %v456_v9, %v341_v29  ;;  %v541_v9 = vsub.f32 1.0, %v874_v7 }
  0xb7   :  { %893 = vpow2.f32 %v518_v23  ;;  %v564_v21 = vmul.f32 %v540_v38, %v1191_v1  ;;  %v560_v1 = vmul.f32 %v536_v11, %v1182_v62  ;;  %v566_v7 = vmul.f32 %v542_v22, %v1217_v14 }
  0xb8   :  { %v524_v44 = vmul.f32 1.442695, %v481_v27  ;;  %v522_v43 = vmul.f32 1.442695, %v480_v36  ;;  %v650_v27 = vsel %vm144_vm2, %v562_v0, 0.0  ;;  %v567_v36 = vmul.f32 %v543_v19, %v1212_v13 }
  0xb9   :  { %v350_v49 = vpop.xlane.xlu1 %349  ;;  %v347_v51 = vpop.xlane.xlu0 %346  ;;  %v565_v40 = vmul.f32 %v541_v9, %v1201_v6  ;;  %v636_v38 = vadd.f32 %v635_v54, %v634_v5  ;;  %v665_v6 = vsel %vm147_vm3, %v560_v1, 0.0 }
  0xba   :  { %895 = vpow2.f32 %v524_v44  ;;  %v483_v47 = vmul.f32 %v459_v30, %v350_v49  ;;  %v482_v56 = vmul.f32 %v458_v28, %v347_v51  ;;  %v649_v30 = vsel %vm144_vm2, %v559_v63, 0.0 }
  0xbb   :  { %897 = vpow2.f32 %v522_v43  ;;  %v880_v2 = vpop.eup %879  ;;  %v563_v28 = vmul.f32 %v539_v52, %v1177_v61  ;;  %v637_v44 = vsel %vm144_vm2, %v564_v21, 0.0  ;;  %v639_v51 = vsel %vm144_vm2, %v567_v36, 0.0 }
  0xbc   :  { %v528_v8 = vmul.f32 1.442695, %v483_v47  ;;  %v882_v57 = vpop.eup %881  ;;  %v526_v17 = vmul.f32 1.442695, %v482_v56  ;;  %v546_v29 = vsub.f32 1.0, %v880_v2  ;;  %v651_v53 = vadd.f32 %v650_v27, %v649_v30 }
  0xbd   :  { %v356_v48 = vpop.xlane.xlu1 %355  ;;  %v884_v10 = vpop.eup %883  ;;  %v545_v32 = vsub.f32 1.0, %v882_v57  ;;  %v666_v62 = vsel %vm147_vm3, %v563_v28, 0.0  ;;  %v652_v0 = vsel %vm144_vm2, %v565_v40, 0.0  ;;  %v668_v56 = vsel %vm147_vm3, %v566_v7, 0.0  ;;  %v630_v7 = vld [vmem:[#allocation2] sm:$0xff] }
  0xbe   :  { %899 = vpow2.f32 %v528_v8  ;;  %v485_v59 = vmul.f32 %v461_v45, %v356_v48  ;;  %v353_v23 = vpop.xlane.xlu0 %352  ;;  %v544_v49 = vsub.f32 1.0, %v884_v10  ;;  %v570_v61 = vmul.f32 %v546_v29, %v1253_v35 }
  0xbf   :  { %v886_v18 = vpop.eup %885  ;;  %901 = vpow2.f32 %v526_v17  ;;  %v484_v60 = vmul.f32 %v460_v55, %v353_v23  ;;  %v569_v13 = vmul.f32 %v545_v32, %v1228_v20  ;;  %v638_v35 = vadd.f32 %v637_v44, %v636_v38 }
  0xc0   :  { %v888_v26 = vpop.eup %887  ;;  %v532_v33 = vmul.f32 1.442695, %v485_v59  ;;  %v549_v37 = vsub.f32 1.0, %v886_v18  ;;  %v568_v54 = vmul.f32 %v544_v49, %v1236_v25  ;;  %v641_v5 = vsel %vm144_vm2, %v570_v61, 0.0 }
  0xc1   :  { %v890_v34 = vpop.eup %889  ;;  %v530_v39 = vmul.f32 1.442695, %v484_v60  ;;  %v548_v45 = vsub.f32 1.0, %v888_v26  ;;  %v667_v8 = vadd.f32 %v666_v62, %v665_v6  ;;  %v640_v57 = vadd.f32 %v639_v51, %v638_v35  ;;  %v632_v6 = vld [vmem:[#allocation2 + $0x10] sm:$0x1] }
  0xc2   :  { %903 = vpow2.f32 %v532_v33  ;;  %v547_v47 = vsub.f32 1.0, %v890_v34  ;;  %v573_v14 = vmul.f32 %v549_v37, %v1263_v41  ;;  %v670_v41 = vsel %vm147_vm3, %v569_v13, 0.0 }
  0xc3   :  { %v892_v43 = vpop.eup %891  ;;  %905 = vpow2.f32 %v530_v39  ;;  %v572_v20 = vmul.f32 %v548_v45, %v1271_v46  ;;  %v653_v10 = vadd.f32 %v652_v0, %v651_v53  ;;  %v669_v25 = vadd.f32 %v668_v56, %v667_v8 }
  0xc4   :  { %v894_v42 = vpop.eup %893  ;;  %v551_v55 = vsub.f32 1.0, %v892_v43  ;;  %v571_v11 = vmul.f32 %v547_v47, %v1246_v31  ;;  %v643_v9 = vsel %vm144_vm2, %v573_v14, 0.0  ;;  %v642_v21 = vadd.f32 %v641_v5, %v640_v57 }
  0xc5   :  { %v550_v63 = vsub.f32 1.0, %v894_v42  ;;  %v654_v46 = vsel %vm144_vm2, %v568_v54, 0.0  ;;  %v672_v59 = vsel %vm147_vm3, %v572_v20, 0.0  ;;  %v671_v31 = vadd.f32 %v670_v41, %v669_v25 }
  0xc6   :  { %v575_v19 = vmul.f32 %v551_v55, %v1279_v50  ;;  %v656_v29 = vsel %vm144_vm2, %v571_v11, 0.0  ;;  %v644_v60 = vadd.f32 %v643_v9, %v642_v21  ;;  %v655_v33 = vadd.f32 %v654_v46, %v653_v10  ;;  %v631_v55 = vld [vmem:[#allocation2 + $0x8] sm:$0xff] }
  0xc7   :  { %v896_v2 = vpop.eup %895  ;;  %v574_v23 = vmul.f32 %v550_v63, %v1288_v58  ;;  %v673_v34 = vadd.f32 %v672_v59, %v671_v31 }
  0xc8   :  { %v898_v52 = vpop.eup %897  ;;  %v553_v17 = vsub.f32 1.0, %v896_v2  ;;  %v674_v26 = vsel %vm147_vm3, %v575_v19, 0.0  ;;  %v657_v40 = vadd.f32 %v656_v29, %v655_v33 }
  0xc9   :  { %v552_v48 = vsub.f32 1.0, %v898_v52  ;;  %v675_v44 = vadd.f32 %v674_v26, %v673_v34 }
  0xca   :  { %v577_v30 = vmul.f32 %v553_v17, %v1296_v3 }
  0xcb   :  { %v900_v22 = vpop.eup %899  ;;  %v576_v18 = vmul.f32 %v552_v48, %v1301_v4  ;;  %v658_v4 = vsel %vm144_vm2, %v574_v23, 0.0 }
  0xcc   :  { %v902_v27 = vpop.eup %901  ;;  %v555_v50 = vsub.f32 1.0, %v900_v22  ;;  %v660_v49 = vsel %vm144_vm2, %v577_v30, 0.0 }
  0xcd   :  { %v645_v28 = vsel %vm144_vm2, %v576_v18, 0.0  ;;  %v554_v32 = vsub.f32 1.0, %v902_v27 }
  0xce   :  { %v579_v1 = vmul.f32 %v555_v50, %v1311_v12  ;;  %v646_v36 = vadd.f32 %v645_v28, %v644_v60  ;;  %v659_v12 = vadd.f32 %v658_v4, %v657_v40 }
  0xcf   :  { %v904_v58 = vpop.eup %903  ;;  %v578_v37 = vmul.f32 %v554_v32, %v1316_v15 }
  0xd0   :  { %v906_v39 = vpop.eup %905  ;;  %v647_v43 = vsel %vm144_vm2, %v579_v1, 0.0  ;;  %v557_v3 = vsub.f32 1.0, %v904_v58  ;;  %v661_v47 = vadd.f32 %v660_v49, %v659_v12 }
  0xd1   :  { %v648_v61 = vadd.f32 %v647_v43, %v646_v36  ;;  %v676_v45 = vsel %vm147_vm3, %v578_v37, 0.0  ;;  %v556_v42 = vsub.f32 1.0, %v906_v39 }
  0xd2   :  { %v581_v38 = vmul.f32 %v557_v3, %v1332_v24  ;;  %v677_v13 = vadd.f32 %v676_v45, %v675_v44 }
  0xd3   :  { %v680_v62 = vadd.f32 %v648_v61, %v630_v7  ;;  %v580_v15 = vmul.f32 %v556_v42, %v1321_v16 }
  0xd4   :  { %v678_v51 = vsel %vm147_vm3, %v581_v38, 0.0 }
  0xd5   :  { %683 = vst.msk [vmem:[#allocation2] sm:$0xff] %vm144_vm2, %v680_v62  ;;  %v679_v14 = vadd.f32 %v678_v51, %v677_v13  ;;  %v662_v53 = vsel %vm144_vm2, %v580_v15, 0.0 }
  0xd6   :  { %v663_v0 = vadd.f32 %v662_v53, %v661_v47  ;;  %v771_v8 = vpop.xlane.xlu1 %770 }
  0xd7   :  { %v682_v35 = vadd.f32 %v679_v14, %v632_v6  ;;  %v772_v57 = vrot.slane %v771_v8, 4 }
  0xd8   :  { %v681_v56 = vadd.f32 %v663_v0, %v631_v55 }
  0xd9   :  { %685 = vst.msk [vmem:[#allocation2 + $0x10] sm:$0x1] %vm147_vm3, %v682_v35  ;;  %v773_v41 = vadd.f32 %v772_v57, %v771_v8 }
  0xda   :  { %684 = vst.msk [vmem:[#allocation2 + $0x8] sm:$0xff] %vm144_vm2, %v681_v56 }
  0xdb   :  { %v774_v11 = vrot.slane %v773_v41, 2 }
  0xdc   :  { %v743_v24 = vld [vmem:[#allocation2] sm:$0xff] }
  0xdd   :  { %v746_v54 = vsel %vm144_vm2, %v743_v24, 0.0  ;;  %v775_v48 = vadd.f32 %v774_v11, %v773_v41 }
  0xdf   :  { %v776_v21 = vrot.slane %v775_v48, 1 }
  0xe0   :  { %v745_v16 = vld [vmem:[#allocation2 + $0x10] sm:$0x1] }
  0xe1   :  { %v744_v2 = vld [vmem:[#allocation2 + $0x8] sm:$0xff]  ;;  %v749_v63 = vsel %vm147_vm3, %v745_v16, 0.0  ;;  %v777_v59 = vadd.f32 %v776_v21, %v775_v48 }
  0xe2   :  { %v747_v5 = vsel %vm144_vm2, %v744_v2, 0.0 }
  0xe3   :  { %v748_v20 = vadd.f32 %v747_v5, %v746_v54 }
  0xe5   :  { %v750_v52 = vadd.f32 %v749_v63, %v748_v20 }
  0xe7   :  { %751 = vadd.xlane.f32.xlu0 %v750_v52 }
 0x170   :  { %v752_v9 = vpop.xlane.xlu0 %751 }
 0x171   :  { %v753_v19 = vrot.slane %v752_v9, 4 }
 0x173   :  { %v754_v17 = vadd.f32 %v753_v19, %v752_v9 }
 0x175   :  { %v755_v10 = vrot.slane %v754_v17, 2 }
 0x177   :  { %v756_v25 = vadd.f32 %v755_v10, %v754_v17 }
 0x179   :  { %v757_v22 = vrot.slane %v756_v25, 1 }
 0x17b   :  { %v758_v46 = vadd.f32 %v757_v22, %v756_v25 }
 0x17d   :  { %830 = vpush %v758_v46 }
 0x17e   :  { %832 = vpush %v777_v59 }
 0x1ae   :  { %s831_s3 = spop %830 }
 0x1af   :  { %s833_s14 = spop %832  ;;  %761 = sst [smem:[#allocation4]] %s831_s3 }
 0x1b0   :  { %780 = sst [smem:[#allocation6]] %s833_s14 }
 0x1b1   :  { %788 = dma.smem_to_hbm %s928_s15, 16, %s1487_s6, [#allocation5]  }
 0x1b2   :  { %796 = dma.smem_to_hbm %s929_s18, 16, %s1488_s7, [#allocation7]  }
 0x1b3   :  { %923 = dma.done.wait [#allocation5], 16  }
 0x1b4   :  { %924 = vsyncadd [#allocation5], 4294967280 }
 0x1b5   :  { %925 = dma.done.wait [#allocation7], 16  }
 0x1b6   :  { %926 = vsyncadd [#allocation7], 4294967280 }
 0x1b7   :  { %803 = sfence }
 0x1b8   :  { %804 = vsyncpa [#allocation5], 1 }
 0x1b9   :  { %805 = vsyncpa [#allocation7], 1 }

</bundles_post_ra>
